<compile_context>
chip_gen: v5e
topology: v5e:2x2
jax: 0.10.0
libtpu: 0.0.40
codegen_flags: <defaults>
</compile_context>

<pallas_src>
import math

import jax
import jax.numpy as jnp
from jax import lax
from jax.experimental import pallas as pl
from jax.experimental.pallas import tpu as pltpu

# Safe scoped-VMEM budget on v5e/v6e/v7x; raise per-generation once tiles are
# production sized (v5e/v6e: up to ~128 MiB physical, v7x: 64 MiB physical).
_VMEM_LIMIT_BYTES = 32 * 1024 * 1024


def _sigmoid(x):
    # Numerically stable sigmoid expressed via a single EUP tanh.
    return 0.5 * (jnp.tanh(0.5 * x) + 1.0)


# ---------------------------------------------------------------------------
# Kernel 1: one (direction, time-block) grid step of the bidirectional LSTM.
#   - input projection for the whole time block: ONE MXU matmul -> VMEM scratch
#   - recurrence over the TT timesteps of the block (bounded unroll)
#   - h/c carries persist in VMEM scratch across time blocks
# ---------------------------------------------------------------------------
def _bilstm_dir_kernel(emb_ref, wih_ref, whh_ref, b_ref,     # inputs
                       out_ref, hn_ref, cn_ref,              # outputs
                       gx_sc, h_sc, c_sc):                   # VMEM scratch
    d = pl.program_id(0)          # direction: 0 = forward, 1 = backward
    i = pl.program_id(1)          # time-block index within this direction

    B, H = h_sc.shape             # B is already padded to a multiple of 8
    TT = gx_sc.shape[0] // B      # timesteps per block

    # Zero the recurrent carry at the first time block of this direction.
    @pl.when(i == 0)
    def _():
        h_sc[...] = jnp.zeros_like(h_sc)
        c_sc[...] = jnp.zeros_like(c_sc)

    # ---- Input projection for the whole time block (off the serial path) ----
    # (TT*B, E)bf16 @ (E, 4H)bf16 -> f32, bias (b_ih + b_hh) folded in here.
    # gx never round-trips through HBM.
    gx_sc[...] = (
        jnp.dot(emb_ref[...], wih_ref[0], preferred_element_type=jnp.float32)
        + b_ref[0]
    )

    whh = whh_ref[0]              # (H, 4H) bf16, pre-transposed; loaded once/block

    def step(kk, carry):
        h, c = carry
        # forward (d=0) walks local steps 0..TT-1; backward (d=1) walks
        # TT-1..0 (the index_map also reverses the block order), so global
        # time strictly decreases for the backward direction.
        k = kk + d * (TT - 1 - 2 * kk)
        row = pl.multiple_of(k * B, B)           # sublane-aligned (B % 8 == 0)
        gates = gx_sc[pl.ds(row, B), :] + jnp.dot(
            h.astype(whh.dtype), whh, preferred_element_type=jnp.float32)
        # PyTorch gate order [i, f, g, o].
        # TODO(synk): for production sizes pad H to 128 so these gate slices
        # and the output stores are 128-lane aligned (here H=32 -> masked vst).
        i_g = _sigmoid(gates[:, 0 * H:1 * H])
        f_g = _sigmoid(gates[:, 1 * H:2 * H])
        g_g = jnp.tanh(gates[:, 2 * H:3 * H])
        o_g = _sigmoid(gates[:, 3 * H:4 * H])
        c = f_g * c + i_g * g_g
        h = o_g * jnp.tanh(c)
        out_ref[0, pl.ds(row, B), :] = h
        return h, c

    # Bounded unroll: only the TT steps of this block are unrolled.
    hT, cT = lax.fori_loop(0, TT, step, (h_sc[...], c_sc[...]), unroll=True)

    # Persist the carry for the next time block; the h_n/c_n block for this
    # direction is revisited across time blocks, so the last write wins.
    h_sc[...] = hT
    c_sc[...] = cT
    hn_ref[0] = hT
    cn_ref[0] = cT


# ---------------------------------------------------------------------------
# Kernel 2: tiny tiled epilogue, outputs = fwd + bwd (per time block).
# ---------------------------------------------------------------------------
def _dir_sum_kernel(x_ref, o_ref):
    o_ref[...] = x_ref[0] + x_ref[1]


def _sum_directions(out2, rows_per_block):
    _, R, H = out2.shape
    nb = R // rows_per_block
    return pl.pallas_call(
        _dir_sum_kernel,
        out_shape=jax.ShapeDtypeStruct((R, H), jnp.float32),
        grid=(nb,),
        in_specs=[pl.BlockSpec((2, rows_per_block, H), lambda i: (0, i, 0))],
        out_specs=pl.BlockSpec((rows_per_block, H), lambda i: (i, 0)),
        compiler_params=pltpu.CompilerParams(
            dimension_semantics=("parallel",),
            vmem_limit_bytes=_VMEM_LIMIT_BYTES),
    )(out2)


# ---------------------------------------------------------------------------
# Parameters and forward pass (EncoderRNN.forward equivalent).
# ---------------------------------------------------------------------------
def init_params(key, vocab_size, embed_size, hidden_size):
    """Deterministic synthetic parameters matching nn.Embedding + nn.LSTM shapes."""
    keys = jax.random.split(key, 9)
    k = 1.0 / math.sqrt(hidden_size)

    def u(kk, shape):
        return jax.random.uniform(kk, shape, jnp.float32, minval=-k, maxval=k)

    return {
        "embedding": jax.random.normal(keys[0], (vocab_size, embed_size),
                                       dtype=jnp.float32),
        # forward direction
        "w_ih_f": u(keys[1], (4 * hidden_size, embed_size)),
        "w_hh_f": u(keys[2], (4 * hidden_size, hidden_size)),
        "b_ih_f": u(keys[3], (4 * hidden_size,)),
        "b_hh_f": u(keys[4], (4 * hidden_size,)),
        # backward direction
        "w_ih_b": u(keys[5], (4 * hidden_size, embed_size)),
        "w_hh_b": u(keys[6], (4 * hidden_size, hidden_size)),
        "b_ih_b": u(keys[7], (4 * hidden_size,)),
        "b_hh_b": u(keys[8], (4 * hidden_size,)),
    }


def _pick_time_block(T, target):
    tt = max(1, min(target, T))
    while T % tt:
        tt -= 1
    return tt


def encoder_rnn_forward(params, src, *, time_block=8):
    """Pallas equivalent of EncoderRNN.forward(src, hidden=None)."""
    # TODO(synk): only the hidden=None path is implemented (zero initial state),
    # matching how the reference module is used.
    T, B = src.shape
    E = params["embedding"].shape[1]
    H = params["w_hh_f"].shape[1]

    tt = _pick_time_block(T, time_block)     # timesteps per grid step
    nb = T // tt                             # time blocks per direction
    B_pad = ((B + 7) // 8) * 8               # pad batch to sublane multiple

    # TODO(synk): embedding gather kept as jnp.take glue; could be fused into
    # the recurrence via PrefetchScalarGridSpec + pl.Element row gather.
    embedded = jnp.take(params["embedding"], src, axis=0)              # (T, B, E)
    if B_pad != B:
        embedded = jnp.pad(embedded, ((0, 0), (0, B_pad - B), (0, 0)))
    # Time-major flattened rows: rows [bi*tt*B_pad, (bi+1)*tt*B_pad) == block bi.
    embedded = embedded.reshape(T * B_pad, E).astype(jnp.bfloat16)

    # One-time wrapper-side layout work: pre-transpose, stack per direction,
    # cast MXU operands to bf16, fold (b_ih + b_hh) once (stays f32).
    w_ih = jnp.stack([params["w_ih_f"].T,
                      params["w_ih_b"].T]).astype(jnp.bfloat16)        # (2, E, 4H)
    w_hh = jnp.stack([params["w_hh_f"].T,
                      params["w_hh_b"].T]).astype(jnp.bfloat16)        # (2, H, 4H)
    bias = jnp.stack([params["b_ih_f"] + params["b_hh_f"],
                      params["b_ih_b"] + params["b_hh_b"]])[:, None, :]  # (2,1,4H)

    # Block index along time: forward (d=0) -> i, backward (d=1) -> nb-1-i.
    tmap = lambda d, i: i + d * (nb - 1 - 2 * i)

    out2, h_n, c_n = pl.pallas_call(
        _bilstm_dir_kernel,
        out_shape=(
            jax.ShapeDtypeStruct((2, T * B_pad, H), jnp.float32),  # per-direction h
            jax.ShapeDtypeStruct((2, B_pad, H), jnp.float32),      # h_n
            jax.ShapeDtypeStruct((2, B_pad, H), jnp.float32),      # c_n
        ),
        grid_spec=pltpu.PrefetchScalarGridSpec(
            num_scalar_prefetch=0,
            grid=(2, nb),
            in_specs=[
                # embedded rows for this time block (streamed, double-buffered)
                pl.BlockSpec((tt * B_pad, E), lambda d, i: (tmap(d, i), 0)),
                # per-direction weights/bias: block index depends only on d,
                # so they are DMA'd once per direction, not per time block.
                pl.BlockSpec((1, E, 4 * H), lambda d, i: (d, 0, 0)),
                pl.BlockSpec((1, H, 4 * H), lambda d, i: (d, 0, 0)),
                pl.BlockSpec((1, 1, 4 * H), lambda d, i: (d, 0, 0)),
            ],
            out_specs=[
                pl.BlockSpec((1, tt * B_pad, H), lambda d, i: (d, tmap(d, i), 0)),
                pl.BlockSpec((1, B_pad, H), lambda d, i: (d, 0, 0)),
                pl.BlockSpec((1, B_pad, H), lambda d, i: (d, 0, 0)),
            ],
            scratch_shapes=[
                pltpu.VMEM((tt * B_pad, 4 * H), jnp.float32),  # gx for this block
                pltpu.VMEM((B_pad, H), jnp.float32),           # h carry
                pltpu.VMEM((B_pad, H), jnp.float32),           # c carry
            ]),
        compiler_params=pltpu.CompilerParams(
            # direction axis is "parallel" -> shards across v7x's 2 TensorCores;
            # time axis is the sequential recurrence -> "arbitrary".
            dimension_semantics=("parallel", "arbitrary"),
            vmem_limit_bytes=_VMEM_LIMIT_BYTES),
    )(embedded, w_ih, w_hh, bias)

    # Tiny epilogue: outputs = forward + backward (race-free across cores).
    outputs = _sum_directions(out2, tt * B_pad).reshape(T, B_pad, H)

    if B_pad != B:
        outputs = outputs[:, :B]
        h_n = h_n[:, :B]
        c_n = c_n[:, :B]
    return outputs, (h_n, c_n)


# ---------------------------------------------------------------------------
# Pure-JAX reference (structural sanity check; mirrors the kernel's bf16-input
# / f32-accumulate matmul numerics so tolerances stay tight).
# ---------------------------------------------------------------------------
def _reference_forward(params, src):
    H = params["w_hh_f"].shape[1]
    emb = jnp.take(params["embedding"], src, axis=0).astype(jnp.bfloat16)

    def run(x_seq, w_ih, w_hh, b):
        w_ih_t = w_ih.astype(jnp.bfloat16).T
        w_hh_t = w_hh.astype(jnp.bfloat16).T

        def step(carry, x_t):
            h, c = carry
            gates = (jnp.dot(x_t, w_ih_t, preferred_element_type=jnp.float32)
                     + jnp.dot(h.astype(jnp.bfloat16), w_hh_t,
                               preferred_element_type=jnp.float32)
                     + b)
            i = jax.nn.sigmoid(gates[:, :H])
            f = jax.nn.sigmoid(gates[:, H:2 * H])
            g = jnp.tanh(gates[:, 2 * H:3 * H])
            o = jax.nn.sigmoid(gates[:, 3 * H:])
            c = f * c + i * g
            h = o * jnp.tanh(c)
            return (h, c), h

        Bv = x_seq.shape[1]
        init = (jnp.zeros((Bv, H), jnp.float32), jnp.zeros((Bv, H), jnp.float32))
        (h_T, c_T), hs = lax.scan(step, init, x_seq)
        return hs, h_T, c_T

    b_f = params["b_ih_f"] + params["b_hh_f"]
    b_b = params["b_ih_b"] + params["b_hh_b"]
    out_f, h_f, c_f = run(emb, params["w_ih_f"], params["w_hh_f"], b_f)
    out_b_rev, h_b, c_b = run(emb[::-1], params["w_ih_b"], params["w_hh_b"], b_b)
    out = out_f + out_b_rev[::-1]
    return out, (jnp.stack([h_f, h_b]), jnp.stack([c_f, c_b]))


if __name__ == "__main__":
    vocab_size, embed_size, hidden_size = 50, 32, 32
    T, B = 8, 4

    key = jax.random.PRNGKey(0)
    k_params, k_src = jax.random.split(key)
    params = init_params(k_params, vocab_size, embed_size, hidden_size)
    src = jax.random.randint(k_src, (T, B), 0, vocab_size, dtype=jnp.int32)

    fwd = jax.jit(encoder_rnn_forward, static_argnames=("time_block",))
    # time_block=4 -> 2 time blocks per direction: exercises the carry-across-
    # grid-steps path of the recurrence kernel even at toy sizes.
    outputs, (h_n, c_n) = fwd(params, src, time_block=4)
    jax.block_until_ready((outputs, h_n, c_n))

    assert outputs.shape == (T, B, hidden_size)
    assert h_n.shape == (2, B, hidden_size)
    assert c_n.shape == (2, B, hidden_size)
    assert outputs.dtype == jnp.float32

    # Structural sanity check (gate order, time reversal, carry chaining,
    # bias folding, fwd/bwd sum) against a plain-JAX scan reference.
    ref_out, (ref_h, ref_c) = jax.jit(_reference_forward)(params, src)
    assert jnp.allclose(outputs, ref_out, atol=2e-2, rtol=2e-2)
    assert jnp.allclose(h_n, ref_h, atol=2e-2, rtol=2e-2)
    assert jnp.allclose(c_n, ref_c, atol=2e-2, rtol=2e-2)

    print("KERNEL_OK")
</pallas_src>

<mosaic_0001>
module attributes {stable_mosaic.version = 11 : i64} {
  func.func @_dir_sum_kernel(%arg0: i32, %arg1: memref<2x32x32xf32, #tpu.memory_space<vmem>>, %arg2: memref<32x32xf32, #tpu.memory_space<vmem>>) attributes {dimension_semantics = [#tpu.dimension_semantics<parallel>], iteration_bounds = array<i64: 2>, scalar_prefetch = 0 : i64, scratch_operands = 0 : i64, tpu.core_type = #tpu.core_type<tc>, window_params = [{transform_indices = @transform_0, window_bounds = array<i64: 2, 32, 32>}, {transform_indices = @transform_1, window_bounds = array<i64: 32, 32>}]} {
    %c0 = arith.constant 0 : index
    %c0_0 = arith.constant 0 : index
    %c0_1 = arith.constant 0 : index
    %0 = vector.load %arg1[%c0, %c0_0, %c0_1] : memref<2x32x32xf32, #tpu.memory_space<vmem>>, vector<1x32x32xf32>
    %1 = vector.shape_cast %0 : vector<1x32x32xf32> to vector<32x32xf32>
    %c1 = arith.constant 1 : index
    %c0_2 = arith.constant 0 : index
    %c0_3 = arith.constant 0 : index
    %2 = vector.load %arg1[%c1, %c0_2, %c0_3] : memref<2x32x32xf32, #tpu.memory_space<vmem>>, vector<1x32x32xf32>
    %3 = vector.shape_cast %2 : vector<1x32x32xf32> to vector<32x32xf32>
    %4 = arith.addf %1, %3 : vector<32x32xf32>
    %c0_4 = arith.constant 0 : index
    %c0_5 = arith.constant 0 : index
    %5 = vector.load %arg2[%c0_4, %c0_5] : memref<32x32xf32, #tpu.memory_space<vmem>>, vector<32x32xf32>
    tpu.vector_store %arg2[%c0_4, %c0_5], %4 {strides = array<i32>} : memref<32x32xf32, #tpu.memory_space<vmem>>, vector<32x32xf32>,
    return
  }
  func.func @transform_0(%arg0: i32) -> (i32, i32, i32) {
    %c0_i32 = arith.constant 0 : i32
    %c0_i32_0 = arith.constant 0 : i32
    %c0_i32_1 = arith.constant 0 : i32
    return %c0_i32, %arg0, %c0_i32_0 : i32, i32, i32
  }
  func.func @transform_1(%arg0: i32) -> (i32, i32) {
    %c0_i32 = arith.constant 0 : i32
    %c0_i32_0 = arith.constant 0 : i32
    return %arg0, %c0_i32 : i32, i32
  }
}

module attributes {stable_mosaic.version = 11 : i64} {
  func.func @_bilstm_dir_kernel(%arg0: i32, %arg1: i32, %arg2: memref<32x32xbf16, #tpu.memory_space<vmem>>, %arg3: memref<1x32x128xbf16, #tpu.memory_space<vmem>>, %arg4: memref<1x32x128xbf16, #tpu.memory_space<vmem>>, %arg5: memref<1x1x128xf32, #tpu.memory_space<vmem>>, %arg6: memref<1x32x32xf32, #tpu.memory_space<vmem>>, %arg7: memref<1x8x32xf32, #tpu.memory_space<vmem>>, %arg8: memref<1x8x32xf32, #tpu.memory_space<vmem>>, %arg9: memref<32x128xf32, #tpu.memory_space<vmem>>, %arg10: memref<8x32xf32, #tpu.memory_space<vmem>>, %arg11: memref<8x32xf32, #tpu.memory_space<vmem>>) attributes {dimension_semantics = [#tpu.dimension_semantics<parallel>, #tpu.dimension_semantics<arbitrary>], iteration_bounds = array<i64: 2, 2>, scalar_prefetch = 0 : i64, scratch_operands = 3 : i64, tpu.core_type = #tpu.core_type<tc>, window_params = [{transform_indices = @transform_0, window_bounds = array<i64: 32, 32>}, {transform_indices = @transform_1, window_bounds = array<i64: 1, 32, 128>}, {transform_indices = @transform_2, window_bounds = array<i64: 1, 32, 128>}, {transform_indices = @transform_3, window_bounds = array<i64: 1, 1, 128>}, {transform_indices = @transform_4, window_bounds = array<i64: 1, 32, 32>}, {transform_indices = @transform_5, window_bounds = array<i64: 1, 8, 32>}, {transform_indices = @transform_6, window_bounds = array<i64: 1, 8, 32>}]} {
    %c0_i32 = arith.constant 0 : i32
    %0 = arith.cmpi eq, %arg1, %c0_i32 : i32
    %1 = arith.extui %0 : i1 to i32
    %c0_i32_0 = arith.constant 0 : i32
    %2 = arith.cmpi ne, %1, %c0_i32_0 : i32
    scf.if %2 {
      %cst_91 = arith.constant 0.000000e+00 : f32
      %208 = vector.broadcast %cst_91 : f32 to vector<8x32xf32>
      %c0_92 = arith.constant 0 : index
      %c0_93 = arith.constant 0 : index
      %209 = vector.load %arg10[%c0_92, %c0_93] : memref<8x32xf32, #tpu.memory_space<vmem>>, vector<8x32xf32>
      tpu.vector_store %arg10[%c0_92, %c0_93], %208 {strides = array<i32>} : memref<8x32xf32, #tpu.memory_space<vmem>>, vector<8x32xf32>,
      %cst_94 = arith.constant 0.000000e+00 : f32
      %210 = vector.broadcast %cst_94 : f32 to vector<8x32xf32>
      %c0_95 = arith.constant 0 : index
      %c0_96 = arith.constant 0 : index
      %211 = vector.load %arg11[%c0_95, %c0_96] : memref<8x32xf32, #tpu.memory_space<vmem>>, vector<8x32xf32>
      tpu.vector_store %arg11[%c0_95, %c0_96], %210 {strides = array<i32>} : memref<8x32xf32, #tpu.memory_space<vmem>>, vector<8x32xf32>,
    } else {
    }
    %c0 = arith.constant 0 : index
    %c0_1 = arith.constant 0 : index
    %3 = vector.load %arg2[%c0, %c0_1] : memref<32x32xbf16, #tpu.memory_space<vmem>>, vector<32x32xbf16>
    %c0_2 = arith.constant 0 : index
    %c0_3 = arith.constant 0 : index
    %c0_4 = arith.constant 0 : index
    %4 = vector.load %arg3[%c0_2, %c0_3, %c0_4] : memref<1x32x128xbf16, #tpu.memory_space<vmem>>, vector<1x32x128xbf16>
    %5 = vector.shape_cast %4 : vector<1x32x128xbf16> to vector<32x128xbf16>
    %cst = arith.constant dense<0.000000e+00> : vector<32x128xf32>
    %6 = tpu.matmul %3, %5, %cst {dimension_numbers = #tpu.dot_dimension_numbers<[1], [0], [0], [1], [0, 0, 1, 1], [], []>} : vector<32x32xbf16>, vector<32x128xbf16>, vector<32x128xf32> -> vector<32x128xf32>
    %c0_5 = arith.constant 0 : index
    %c0_6 = arith.constant 0 : index
    %c0_7 = arith.constant 0 : index
    %7 = vector.load %arg5[%c0_5, %c0_6, %c0_7] : memref<1x1x128xf32, #tpu.memory_space<vmem>>, vector<1x1x128xf32>
    %8 = vector.shape_cast %7 : vector<1x1x128xf32> to vector<1x128xf32>
    %9 = vector.broadcast %8 : vector<1x128xf32> to vector<32x128xf32>
    %10 = arith.addf %6, %9 : vector<32x128xf32>
    %c0_8 = arith.constant 0 : index
    %c0_9 = arith.constant 0 : index
    %11 = vector.load %arg9[%c0_8, %c0_9] : memref<32x128xf32, #tpu.memory_space<vmem>>, vector<32x128xf32>
    tpu.vector_store %arg9[%c0_8, %c0_9], %10 {strides = array<i32>} : memref<32x128xf32, #tpu.memory_space<vmem>>, vector<32x128xf32>,
    %c0_10 = arith.constant 0 : index
    %c0_11 = arith.constant 0 : index
    %c0_12 = arith.constant 0 : index
    %12 = vector.load %arg4[%c0_10, %c0_11, %c0_12] : memref<1x32x128xbf16, #tpu.memory_space<vmem>>, vector<1x32x128xbf16>
    %13 = vector.shape_cast %12 : vector<1x32x128xbf16> to vector<32x128xbf16>
    %c0_13 = arith.constant 0 : index
    %c0_14 = arith.constant 0 : index
    %14 = vector.load %arg10[%c0_13, %c0_14] : memref<8x32xf32, #tpu.memory_space<vmem>>, vector<8x32xf32>
    %c0_15 = arith.constant 0 : index
    %c0_16 = arith.constant 0 : index
    %15 = vector.load %arg11[%c0_15, %c0_16] : memref<8x32xf32, #tpu.memory_space<vmem>>, vector<8x32xf32>
    %c0_i32_17 = arith.constant 0 : i32
    %c2_i32 = arith.constant 2 : i32
    %16 = arith.muli %c2_i32, %c0_i32_17 : i32
    %c3_i32 = arith.constant 3 : i32
    %17 = arith.subi %c3_i32, %16 : i32
    %18 = arith.muli %arg0, %17 : i32
    %19 = arith.addi %c0_i32_17, %18 : i32
    %c8_i32 = arith.constant 8 : i32
    %20 = arith.muli %19, %c8_i32 : i32
    %21 = tpu.assume_multiple %20, 8 : i32
    %22 = arith.index_cast %21 : i32 to index
    %c0_18 = arith.constant 0 : index
    %23 = vector.load %arg9[%22, %c0_18] : memref<32x128xf32, #tpu.memory_space<vmem>>, vector<8x128xf32>
    %24 = arith.truncf %14 : vector<8x32xf32> to vector<8x32xbf16>
    %cst_19 = arith.constant dense<0.000000e+00> : vector<8x128xf32>
    %25 = tpu.matmul %24, %13, %cst_19 {dimension_numbers = #tpu.dot_dimension_numbers<[1], [0], [0], [1], [0, 0, 1, 1], [], []>} : vector<8x32xbf16>, vector<32x128xbf16>, vector<8x128xf32> -> vector<8x128xf32>
    %26 = arith.addf %23, %25 : vector<8x128xf32>
    %27 = vector.extract_strided_slice %26 {offsets = [0, 0], sizes = [8, 32], strides = [1, 1]} : vector<8x128xf32> to vector<8x32xf32>
    %cst_20 = arith.constant 5.000000e-01 : f32
    %28 = vector.broadcast %cst_20 : f32 to vector<8x32xf32>
    %29 = arith.mulf %28, %27 : vector<8x32xf32>
    %30 = math.tanh %29 : vector<8x32xf32>
    %cst_21 = arith.constant 1.000000e+00 : f32
    %31 = vector.broadcast %cst_21 : f32 to vector<8x32xf32>
    %32 = arith.addf %30, %31 : vector<8x32xf32>
    %cst_22 = arith.constant 5.000000e-01 : f32
    %33 = vector.broadcast %cst_22 : f32 to vector<8x32xf32>
    %34 = arith.mulf %33, %32 : vector<8x32xf32>
    %35 = vector.extract_strided_slice %26 {offsets = [0, 32], sizes = [8, 32], strides = [1, 1]} : vector<8x128xf32> to vector<8x32xf32>
    %cst_23 = arith.constant 5.000000e-01 : f32
    %36 = vector.broadcast %cst_23 : f32 to vector<8x32xf32>
    %37 = arith.mulf %36, %35 : vector<8x32xf32>
    %38 = math.tanh %37 : vector<8x32xf32>
    %cst_24 = arith.constant 1.000000e+00 : f32
    %39 = vector.broadcast %cst_24 : f32 to vector<8x32xf32>
    %40 = arith.addf %38, %39 : vector<8x32xf32>
    %cst_25 = arith.constant 5.000000e-01 : f32
    %41 = vector.broadcast %cst_25 : f32 to vector<8x32xf32>
    %42 = arith.mulf %41, %40 : vector<8x32xf32>
    %43 = vector.extract_strided_slice %26 {offsets = [0, 64], sizes = [8, 32], strides = [1, 1]} : vector<8x128xf32> to vector<8x32xf32>
    %44 = math.tanh %43 : vector<8x32xf32>
    %45 = vector.extract_strided_slice %26 {offsets = [0, 96], sizes = [8, 32], strides = [1, 1]} : vector<8x128xf32> to vector<8x32xf32>
    %cst_26 = arith.constant 5.000000e-01 : f32
    %46 = vector.broadcast %cst_26 : f32 to vector<8x32xf32>
    %47 = arith.mulf %46, %45 : vector<8x32xf32>
    %48 = math.tanh %47 : vector<8x32xf32>
    %cst_27 = arith.constant 1.000000e+00 : f32
    %49 = vector.broadcast %cst_27 : f32 to vector<8x32xf32>
    %50 = arith.addf %48, %49 : vector<8x32xf32>
    %cst_28 = arith.constant 5.000000e-01 : f32
    %51 = vector.broadcast %cst_28 : f32 to vector<8x32xf32>
    %52 = arith.mulf %51, %50 : vector<8x32xf32>
    %53 = arith.mulf %42, %15 : vector<8x32xf32>
    %54 = arith.mulf %34, %44 : vector<8x32xf32>
    %55 = arith.addf %53, %54 : vector<8x32xf32>
    %56 = math.tanh %55 : vector<8x32xf32>
    %57 = arith.mulf %52, %56 : vector<8x32xf32>
    %c0_29 = arith.constant 0 : index
    %58 = arith.index_cast %21 : i32 to index
    %c0_30 = arith.constant 0 : index
    %59 = vector.load %arg6[%c0_29, %58, %c0_30] : memref<1x32x32xf32, #tpu.memory_space<vmem>>, vector<1x8x32xf32>
    %60 = vector.shape_cast %59 : vector<1x8x32xf32> to vector<8x32xf32>
    %61 = vector.shape_cast %57 : vector<8x32xf32> to vector<1x8x32xf32>
    tpu.vector_store %arg6[%c0_29, %58, %c0_30], %61 {strides = array<i32>} : memref<1x32x32xf32, #tpu.memory_space<vmem>>, vector<1x8x32xf32>,
    %c1_i32 = arith.constant 1 : i32
    %c2_i32_31 = arith.constant 2 : i32
    %62 = arith.muli %c2_i32_31, %c1_i32 : i32
    %c3_i32_32 = arith.constant 3 : i32
    %63 = arith.subi %c3_i32_32, %62 : i32
    %64 = arith.muli %arg0, %63 : i32
    %65 = arith.addi %c1_i32, %64 : i32
    %c8_i32_33 = arith.constant 8 : i32
    %66 = arith.muli %65, %c8_i32_33 : i32
    %67 = tpu.assume_multiple %66, 8 : i32
    %68 = arith.index_cast %67 : i32 to index
    %c0_34 = arith.constant 0 : index
    %69 = vector.load %arg9[%68, %c0_34] : memref<32x128xf32, #tpu.memory_space<vmem>>, vector<8x128xf32>
    %70 = arith.truncf %57 : vector<8x32xf32> to vector<8x32xbf16>
    %cst_35 = arith.constant dense<0.000000e+00> : vector<8x128xf32>
    %71 = tpu.matmul %70, %13, %cst_35 {dimension_numbers = #tpu.dot_dimension_numbers<[1], [0], [0], [1], [0, 0, 1, 1], [], []>} : vector<8x32xbf16>, vector<32x128xbf16>, vector<8x128xf32> -> vector<8x128xf32>
    %72 = arith.addf %69, %71 : vector<8x128xf32>
    %73 = vector.extract_strided_slice %72 {offsets = [0, 0], sizes = [8, 32], strides = [1, 1]} : vector<8x128xf32> to vector<8x32xf32>
    %cst_36 = arith.constant 5.000000e-01 : f32
    %74 = vector.broadcast %cst_36 : f32 to vector<8x32xf32>
    %75 = arith.mulf %74, %73 : vector<8x32xf32>
    %76 = math.tanh %75 : vector<8x32xf32>
    %cst_37 = arith.constant 1.000000e+00 : f32
    %77 = vector.broadcast %cst_37 : f32 to vector<8x32xf32>
    %78 = arith.addf %76, %77 : vector<8x32xf32>
    %cst_38 = arith.constant 5.000000e-01 : f32
    %79 = vector.broadcast %cst_38 : f32 to vector<8x32xf32>
    %80 = arith.mulf %79, %78 : vector<8x32xf32>
    %81 = vector.extract_strided_slice %72 {offsets = [0, 32], sizes = [8, 32], strides = [1, 1]} : vector<8x128xf32> to vector<8x32xf32>
    %cst_39 = arith.constant 5.000000e-01 : f32
    %82 = vector.broadcast %cst_39 : f32 to vector<8x32xf32>
    %83 = arith.mulf %82, %81 : vector<8x32xf32>
    %84 = math.tanh %83 : vector<8x32xf32>
    %cst_40 = arith.constant 1.000000e+00 : f32
    %85 = vector.broadcast %cst_40 : f32 to vector<8x32xf32>
    %86 = arith.addf %84, %85 : vector<8x32xf32>
    %cst_41 = arith.constant 5.000000e-01 : f32
    %87 = vector.broadcast %cst_41 : f32 to vector<8x32xf32>
    %88 = arith.mulf %87, %86 : vector<8x32xf32>
    %89 = vector.extract_strided_slice %72 {offsets = [0, 64], sizes = [8, 32], strides = [1, 1]} : vector<8x128xf32> to vector<8x32xf32>
    %90 = math.tanh %89 : vector<8x32xf32>
    %91 = vector.extract_strided_slice %72 {offsets = [0, 96], sizes = [8, 32], strides = [1, 1]} : vector<8x128xf32> to vector<8x32xf32>
    %cst_42 = arith.constant 5.000000e-01 : f32
    %92 = vector.broadcast %cst_42 : f32 to vector<8x32xf32>
    %93 = arith.mulf %92, %91 : vector<8x32xf32>
    %94 = math.tanh %93 : vector<8x32xf32>
    %cst_43 = arith.constant 1.000000e+00 : f32
    %95 = vector.broadcast %cst_43 : f32 to vector<8x32xf32>
    %96 = arith.addf %94, %95 : vector<8x32xf32>
    %cst_44 = arith.constant 5.000000e-01 : f32
    %97 = vector.broadcast %cst_44 : f32 to vector<8x32xf32>
    %98 = arith.mulf %97, %96 : vector<8x32xf32>
    %99 = arith.mulf %88, %55 : vector<8x32xf32>
    %100 = arith.mulf %80, %90 : vector<8x32xf32>
    %101 = arith.addf %99, %100 : vector<8x32xf32>
    %102 = math.tanh %101 : vector<8x32xf32>
    %103 = arith.mulf %98, %102 : vector<8x32xf32>
    %c0_45 = arith.constant 0 : index
    %104 = arith.index_cast %67 : i32 to index
    %c0_46 = arith.constant 0 : index
    %105 = vector.load %arg6[%c0_45, %104, %c0_46] : memref<1x32x32xf32, #tpu.memory_space<vmem>>, vector<1x8x32xf32>
    %106 = vector.shape_cast %105 : vector<1x8x32xf32> to vector<8x32xf32>
    %107 = vector.shape_cast %103 : vector<8x32xf32> to vector<1x8x32xf32>
    tpu.vector_store %arg6[%c0_45, %104, %c0_46], %107 {strides = array<i32>} : memref<1x32x32xf32, #tpu.memory_space<vmem>>, vector<1x8x32xf32>,
    %c2_i32_47 = arith.constant 2 : i32
    %c2_i32_48 = arith.constant 2 : i32
    %108 = arith.muli %c2_i32_48, %c2_i32_47 : i32
    %c3_i32_49 = arith.constant 3 : i32
    %109 = arith.subi %c3_i32_49, %108 : i32
    %110 = arith.muli %arg0, %109 : i32
    %111 = arith.addi %c2_i32_47, %110 : i32
    %c8_i32_50 = arith.constant 8 : i32
    %112 = arith.muli %111, %c8_i32_50 : i32
    %113 = tpu.assume_multiple %112, 8 : i32
    %114 = arith.index_cast %113 : i32 to index
    %c0_51 = arith.constant 0 : index
    %115 = vector.load %arg9[%114, %c0_51] : memref<32x128xf32, #tpu.memory_space<vmem>>, vector<8x128xf32>
    %116 = arith.truncf %103 : vector<8x32xf32> to vector<8x32xbf16>
    %cst_52 = arith.constant dense<0.000000e+00> : vector<8x128xf32>
    %117 = tpu.matmul %116, %13, %cst_52 {dimension_numbers = #tpu.dot_dimension_numbers<[1], [0], [0], [1], [0, 0, 1, 1], [], []>} : vector<8x32xbf16>, vector<32x128xbf16>, vector<8x128xf32> -> vector<8x128xf32>
    %118 = arith.addf %115, %117 : vector<8x128xf32>
    %119 = vector.extract_strided_slice %118 {offsets = [0, 0], sizes = [8, 32], strides = [1, 1]} : vector<8x128xf32> to vector<8x32xf32>
    %cst_53 = arith.constant 5.000000e-01 : f32
    %120 = vector.broadcast %cst_53 : f32 to vector<8x32xf32>
    %121 = arith.mulf %120, %119 : vector<8x32xf32>
    %122 = math.tanh %121 : vector<8x32xf32>
    %cst_54 = arith.constant 1.000000e+00 : f32
    %123 = vector.broadcast %cst_54 : f32 to vector<8x32xf32>
    %124 = arith.addf %122, %123 : vector<8x32xf32>
    %cst_55 = arith.constant 5.000000e-01 : f32
    %125 = vector.broadcast %cst_55 : f32 to vector<8x32xf32>
    %126 = arith.mulf %125, %124 : vector<8x32xf32>
    %127 = vector.extract_strided_slice %118 {offsets = [0, 32], sizes = [8, 32], strides = [1, 1]} : vector<8x128xf32> to vector<8x32xf32>
    %cst_56 = arith.constant 5.000000e-01 : f32
    %128 = vector.broadcast %cst_56 : f32 to vector<8x32xf32>
    %129 = arith.mulf %128, %127 : vector<8x32xf32>
    %130 = math.tanh %129 : vector<8x32xf32>
    %cst_57 = arith.constant 1.000000e+00 : f32
    %131 = vector.broadcast %cst_57 : f32 to vector<8x32xf32>
    %132 = arith.addf %130, %131 : vector<8x32xf32>
    %cst_58 = arith.constant 5.000000e-01 : f32
    %133 = vector.broadcast %cst_58 : f32 to vector<8x32xf32>
    %134 = arith.mulf %133, %132 : vector<8x32xf32>
    %135 = vector.extract_strided_slice %118 {offsets = [0, 64], sizes = [8, 32], strides = [1, 1]} : vector<8x128xf32> to vector<8x32xf32>
    %136 = math.tanh %135 : vector<8x32xf32>
    %137 = vector.extract_strided_slice %118 {offsets = [0, 96], sizes = [8, 32], strides = [1, 1]} : vector<8x128xf32> to vector<8x32xf32>
    %cst_59 = arith.constant 5.000000e-01 : f32
    %138 = vector.broadcast %cst_59 : f32 to vector<8x32xf32>
    %139 = arith.mulf %138, %137 : vector<8x32xf32>
    %140 = math.tanh %139 : vector<8x32xf32>
    %cst_60 = arith.constant 1.000000e+00 : f32
    %141 = vector.broadcast %cst_60 : f32 to vector<8x32xf32>
    %142 = arith.addf %140, %141 : vector<8x32xf32>
    %cst_61 = arith.constant 5.000000e-01 : f32
    %143 = vector.broadcast %cst_61 : f32 to vector<8x32xf32>
    %144 = arith.mulf %143, %142 : vector<8x32xf32>
    %145 = arith.mulf %134, %101 : vector<8x32xf32>
    %146 = arith.mulf %126, %136 : vector<8x32xf32>
    %147 = arith.addf %145, %146 : vector<8x32xf32>
    %148 = math.tanh %147 : vector<8x32xf32>
    %149 = arith.mulf %144, %148 : vector<8x32xf32>
    %c0_62 = arith.constant 0 : index
    %150 = arith.index_cast %113 : i32 to index
    %c0_63 = arith.constant 0 : index
    %151 = vector.load %arg6[%c0_62, %150, %c0_63] : memref<1x32x32xf32, #tpu.memory_space<vmem>>, vector<1x8x32xf32>
    %152 = vector.shape_cast %151 : vector<1x8x32xf32> to vector<8x32xf32>
    %153 = vector.shape_cast %149 : vector<8x32xf32> to vector<1x8x32xf32>
    tpu.vector_store %arg6[%c0_62, %150, %c0_63], %153 {strides = array<i32>} : memref<1x32x32xf32, #tpu.memory_space<vmem>>, vector<1x8x32xf32>,
    %c3_i32_64 = arith.constant 3 : i32
    %c2_i32_65 = arith.constant 2 : i32
    %154 = arith.muli %c2_i32_65, %c3_i32_64 : i32
    %c3_i32_66 = arith.constant 3 : i32
    %155 = arith.subi %c3_i32_66, %154 : i32
    %156 = arith.muli %arg0, %155 : i32
    %157 = arith.addi %c3_i32_64, %156 : i32
    %c8_i32_67 = arith.constant 8 : i32
    %158 = arith.muli %157, %c8_i32_67 : i32
    %159 = tpu.assume_multiple %158, 8 : i32
    %160 = arith.index_cast %159 : i32 to index
    %c0_68 = arith.constant 0 : index
    %161 = vector.load %arg9[%160, %c0_68] : memref<32x128xf32, #tpu.memory_space<vmem>>, vector<8x128xf32>
    %162 = arith.truncf %149 : vector<8x32xf32> to vector<8x32xbf16>
    %cst_69 = arith.constant dense<0.000000e+00> : vector<8x128xf32>
    %163 = tpu.matmul %162, %13, %cst_69 {dimension_numbers = #tpu.dot_dimension_numbers<[1], [0], [0], [1], [0, 0, 1, 1], [], []>} : vector<8x32xbf16>, vector<32x128xbf16>, vector<8x128xf32> -> vector<8x128xf32>
    %164 = arith.addf %161, %163 : vector<8x128xf32>
    %165 = vector.extract_strided_slice %164 {offsets = [0, 0], sizes = [8, 32], strides = [1, 1]} : vector<8x128xf32> to vector<8x32xf32>
    %cst_70 = arith.constant 5.000000e-01 : f32
    %166 = vector.broadcast %cst_70 : f32 to vector<8x32xf32>
    %167 = arith.mulf %166, %165 : vector<8x32xf32>
    %168 = math.tanh %167 : vector<8x32xf32>
    %cst_71 = arith.constant 1.000000e+00 : f32
    %169 = vector.broadcast %cst_71 : f32 to vector<8x32xf32>
    %170 = arith.addf %168, %169 : vector<8x32xf32>
    %cst_72 = arith.constant 5.000000e-01 : f32
    %171 = vector.broadcast %cst_72 : f32 to vector<8x32xf32>
    %172 = arith.mulf %171, %170 : vector<8x32xf32>
    %173 = vector.extract_strided_slice %164 {offsets = [0, 32], sizes = [8, 32], strides = [1, 1]} : vector<8x128xf32> to vector<8x32xf32>
    %cst_73 = arith.constant 5.000000e-01 : f32
    %174 = vector.broadcast %cst_73 : f32 to vector<8x32xf32>
    %175 = arith.mulf %174, %173 : vector<8x32xf32>
    %176 = math.tanh %175 : vector<8x32xf32>
    %cst_74 = arith.constant 1.000000e+00 : f32
    %177 = vector.broadcast %cst_74 : f32 to vector<8x32xf32>
    %178 = arith.addf %176, %177 : vector<8x32xf32>
    %cst_75 = arith.constant 5.000000e-01 : f32
    %179 = vector.broadcast %cst_75 : f32 to vector<8x32xf32>
    %180 = arith.mulf %179, %178 : vector<8x32xf32>
    %181 = vector.extract_strided_slice %164 {offsets = [0, 64], sizes = [8, 32], strides = [1, 1]} : vector<8x128xf32> to vector<8x32xf32>
    %182 = math.tanh %181 : vector<8x32xf32>
    %183 = vector.extract_strided_slice %164 {offsets = [0, 96], sizes = [8, 32], strides = [1, 1]} : vector<8x128xf32> to vector<8x32xf32>
    %cst_76 = arith.constant 5.000000e-01 : f32
    %184 = vector.broadcast %cst_76 : f32 to vector<8x32xf32>
    %185 = arith.mulf %184, %183 : vector<8x32xf32>
    %186 = math.tanh %185 : vector<8x32xf32>
    %cst_77 = arith.constant 1.000000e+00 : f32
    %187 = vector.broadcast %cst_77 : f32 to vector<8x32xf32>
    %188 = arith.addf %186, %187 : vector<8x32xf32>
    %cst_78 = arith.constant 5.000000e-01 : f32
    %189 = vector.broadcast %cst_78 : f32 to vector<8x32xf32>
    %190 = arith.mulf %189, %188 : vector<8x32xf32>
    %191 = arith.mulf %180, %147 : vector<8x32xf32>
    %192 = arith.mulf %172, %182 : vector<8x32xf32>
    %193 = arith.addf %191, %192 : vector<8x32xf32>
    %194 = math.tanh %193 : vector<8x32xf32>
    %195 = arith.mulf %190, %194 : vector<8x32xf32>
    %c0_79 = arith.constant 0 : index
    %196 = arith.index_cast %159 : i32 to index
    %c0_80 = arith.constant 0 : index
    %197 = vector.load %arg6[%c0_79, %196, %c0_80] : memref<1x32x32xf32, #tpu.memory_space<vmem>>, vector<1x8x32xf32>
    %198 = vector.shape_cast %197 : vector<1x8x32xf32> to vector<8x32xf32>
    %199 = vector.shape_cast %195 : vector<8x32xf32> to vector<1x8x32xf32>
    tpu.vector_store %arg6[%c0_79, %196, %c0_80], %199 {strides = array<i32>} : memref<1x32x32xf32, #tpu.memory_space<vmem>>, vector<1x8x32xf32>,
    %c4_i32 = arith.constant 4 : i32
    %c0_81 = arith.constant 0 : index
    %c0_82 = arith.constant 0 : index
    %200 = vector.load %arg10[%c0_81, %c0_82] : memref<8x32xf32, #tpu.memory_space<vmem>>, vector<8x32xf32>
    tpu.vector_store %arg10[%c0_81, %c0_82], %195 {strides = array<i32>} : memref<8x32xf32, #tpu.memory_space<vmem>>, vector<8x32xf32>,
    %c0_83 = arith.constant 0 : index
    %c0_84 = arith.constant 0 : index
    %201 = vector.load %arg11[%c0_83, %c0_84] : memref<8x32xf32, #tpu.memory_space<vmem>>, vector<8x32xf32>
    tpu.vector_store %arg11[%c0_83, %c0_84], %193 {strides = array<i32>} : memref<8x32xf32, #tpu.memory_space<vmem>>, vector<8x32xf32>,
    %c0_85 = arith.constant 0 : index
    %c0_86 = arith.constant 0 : index
    %c0_87 = arith.constant 0 : index
    %202 = vector.load %arg7[%c0_85, %c0_86, %c0_87] : memref<1x8x32xf32, #tpu.memory_space<vmem>>, vector<1x8x32xf32>
    %203 = vector.shape_cast %202 : vector<1x8x32xf32> to vector<8x32xf32>
    %204 = vector.shape_cast %195 : vector<8x32xf32> to vector<1x8x32xf32>
    tpu.vector_store %arg7[%c0_85, %c0_86, %c0_87], %204 {strides = array<i32>} : memref<1x8x32xf32, #tpu.memory_space<vmem>>, vector<1x8x32xf32>,
    %c0_88 = arith.constant 0 : index
    %c0_89 = arith.constant 0 : index
    %c0_90 = arith.constant 0 : index
    %205 = vector.load %arg8[%c0_88, %c0_89, %c0_90] : memref<1x8x32xf32, #tpu.memory_space<vmem>>, vector<1x8x32xf32>
    %206 = vector.shape_cast %205 : vector<1x8x32xf32> to vector<8x32xf32>
    %207 = vector.shape_cast %193 : vector<8x32xf32> to vector<1x8x32xf32>
    tpu.vector_store %arg8[%c0_88, %c0_89, %c0_90], %207 {strides = array<i32>} : memref<1x8x32xf32, #tpu.memory_space<vmem>>, vector<1x8x32xf32>,
    return
  }
  func.func @transform_0(%arg0: i32, %arg1: i32) -> (i32, i32) {
    %c2_i32 = arith.constant 2 : i32
    %0 = arith.muli %c2_i32, %arg1 : i32
    %c1_i32 = arith.constant 1 : i32
    %1 = arith.subi %c1_i32, %0 : i32
    %2 = arith.muli %arg0, %1 : i32
    %3 = arith.addi %arg1, %2 : i32
    %c0_i32 = arith.constant 0 : i32
    %c0_i32_0 = arith.constant 0 : i32
    return %3, %c0_i32 : i32, i32
  }
  func.func @transform_1(%arg0: i32, %arg1: i32) -> (i32, i32, i32) {
    %c0_i32 = arith.constant 0 : i32
    %c0_i32_0 = arith.constant 0 : i32
    %c0_i32_1 = arith.constant 0 : i32
    return %arg0, %c0_i32, %c0_i32_0 : i32, i32, i32
  }
  func.func @transform_2(%arg0: i32, %arg1: i32) -> (i32, i32, i32) {
    %c0_i32 = arith.constant 0 : i32
    %c0_i32_0 = arith.constant 0 : i32
    %c0_i32_1 = arith.constant 0 : i32
    return %arg0, %c0_i32, %c0_i32_0 : i32, i32, i32
  }
  func.func @transform_3(%arg0: i32, %arg1: i32) -> (i32, i32, i32) {
    %c0_i32 = arith.constant 0 : i32
    %c0_i32_0 = arith.constant 0 : i32
    %c0_i32_1 = arith.constant 0 : i32
    return %arg0, %c0_i32, %c0_i32_0 : i32, i32, i32
  }
  func.func @transform_4(%arg0: i32, %arg1: i32) -> (i32, i32, i32) {
    %c2_i32 = arith.constant 2 : i32
    %0 = arith.muli %c2_i32, %arg1 : i32
    %c1_i32 = arith.constant 1 : i32
    %1 = arith.subi %c1_i32, %0 : i32
    %2 = arith.muli %arg0, %1 : i32
    %3 = arith.addi %arg1, %2 : i32
    %c0_i32 = arith.constant 0 : i32
    %c0_i32_0 = arith.constant 0 : i32
    return %arg0, %3, %c0_i32 : i32, i32, i32
  }
  func.func @transform_5(%arg0: i32, %arg1: i32) -> (i32, i32, i32) {
    %c0_i32 = arith.constant 0 : i32
    %c0_i32_0 = arith.constant 0 : i32
    %c0_i32_1 = arith.constant 0 : i32
    return %arg0, %c0_i32, %c0_i32_0 : i32, i32, i32
  }
  func.func @transform_6(%arg0: i32, %arg1: i32) -> (i32, i32, i32) {
    %c0_i32 = arith.constant 0 : i32
    %c0_i32_0 = arith.constant 0 : i32
    %c0_i32_1 = arith.constant 0 : i32
    return %arg0, %c0_i32, %c0_i32_0 : i32, i32, i32
  }
}

</mosaic_0001>

<bundles_post_ra>
// kernel: encoder_rnn_forward.3
= control target key start
LH: loop header
LB: loop body
LE: loop exit
PB: predicated region body
PF: predicated region fallthrough
CT: control target
= control target key end

     0   :  { %s339_s6 = smov 0   ;;  %s341_s7 = smov 0   ;;  %s391_s0 = inlined_call_operand.vmem [shape: f32[2,64,32], index: 0, kind: input, shape index: {}]   ;;  %s392_s1 = inlined_call_operand.vmem [shape: f32[64,32], index: 1, kind: output, shape index: {}]  }
   0x1   :  { %s343_s8 = smov 0  }
   0x2 LB: > { %s263_s9 = sadd.s32 4294967295, %s327_s8   ;;  %s356_s10 = sadd.s32 1, %s327_s8   ;;  %s327_s8 = sphi %s343_s8, %s395_s8   ;;  %s323_s7 = sphi %s341_s7, %s394_s7   ;;  %s319_s6 = sphi %s339_s6, %s393_s6  }
   0x3   : > { %s15_s11 = ssub.s32 %s327_s8, %s356_s10  ;;  %s18_s12 = sadd.s32 1, %s323_s7 }
   0x4   : > { %p16_p0 = scmp.eq.s32.totalorder %s15_s11, 0  ;;  %p25_p1 = scmp.ne.s32.totalorder %s323_s7, %s319_s6 }
   0x5   : > { %p26_p2 = scmp.eq.s32.totalorder %s327_s8, 0  ;;  %p266_p4 = scmp.ge.s32.totalorder %s327_s8, 2 }
   0x6   : > { %s365_s13 = scalar_select %p16_p0, %s323_s7, %s18_s12  }
   0x7   : > { %p27_p3 = por %p26_p2, %p25_p1  ;;  %77 = sbr.rel (%p266_p4) target bundleno = 24 (0x18), region = 16 }
   0xc   : > { %80 = sbr.rel (!%p27_p3) target bundleno = 24 (0x18), region = 20  ;;  %s82_s14 = sand.u32 (%p27_p3), 1, %s323_s7  }
   0xd   : > { %s280_s15 = sshll.u32 (%p27_p3), %s327_s8, 5  ;;  %s267_s16 = sshll.u32 (%p27_p3), %s82_s14, 6 }
   0xe   : > { %s87_s19 = scalar_lea.vmem (%p27_p3), %s391_s0, %s280_s15  ;;  %s84_s20 = scalar_lea.vmem (%p27_p3), [#allocation2], %s267_s16 }
   0xf   : > { %v130_v0 = vld [vmem:[%s87_s19] sm:$0xff] (%p27_p3)  ;;  %v132_v1 = vld [vmem:[%s87_s19 + $0x8] sm:$0xff] (%p27_p3)  ;;  %v134_v2 = vld [vmem:[%s87_s19 + $0x10] sm:$0xff] (%p27_p3) }
  0x10   : > { %131 = vst [vmem:[%s84_s20] sm:$0xff] (%p27_p3), %v130_v0  ;;  %v136_v3 = vld [vmem:[%s87_s19 + $0x18] sm:$0xff] (%p27_p3)  ;;  %v138_v4 = vld [vmem:[%s87_s19 + $0x40] sm:$0xff] (%p27_p3)  ;;  %v140_v5 = vld [vmem:[%s87_s19 + $0x48] sm:$0xff] (%p27_p3) }
  0x11   : > { %133 = vst [vmem:[%s84_s20 + $0x8] sm:$0xff] %v132_v1  ;;  %v142_v6 = vld [vmem:[%s87_s19 + $0x50] sm:$0xff]  ;;  %v144_v7 = vld [vmem:[%s87_s19 + $0x58] sm:$0xff] }
  0x12   : > { %135 = vst [vmem:[%s84_s20 + $0x10] sm:$0xff] %v134_v2 }
  0x13   : > { %137 = vst [vmem:[%s84_s20 + $0x18] sm:$0xff] %v136_v3 }
  0x14   : > { %139 = vst [vmem:[%s84_s20 + $0x20] sm:$0xff] %v138_v4 }
  0x15   : > { %141 = vst [vmem:[%s84_s20 + $0x28] sm:$0xff] %v140_v5 }
  0x16   : > { %143 = vst [vmem:[%s84_s20 + $0x30] sm:$0xff] %v142_v6 }
  0x17   : > { %145 = vst [vmem:[%s84_s20 + $0x38] sm:$0xff] %v144_v7 }
  0x18 PF: > { %p270_p5 = scmp.ge.s32.totalorder %s327_s8, 1  ;;  %p150_p6 = scmp.lt.s32.totalorder %s327_s8, 3 }
  0x1a   : > { %p151_p7 = pnand %p270_p5, %p150_p6 }
  0x1b   : > { %s157_s21 = sand.u32 (!%p151_p7), 1, %s319_s6   ;;  %s272_s22 = sshll.u32 (!%p151_p7), %s263_s9, 2 }
  0x1c   : > { %154 = sbr.rel (%p151_p7) target bundleno = 41 (0x29), region = 58  ;;  %s271_s23 = sshll.u32 (!%p151_p7), %s157_s21, 6 }
  0x1d   : > { %p178_p8 = scmp.lt.s32.totalorder (!%p151_p7), %s272_s22, 7  ;;  %s159_s24 = scalar_lea.vmem (!%p151_p7), [#allocation2], %s271_s23 }
  0x21   : > { %s397_s22 = smov (!%p178_p8, %s272_s22), 7  ;;  %v183_v8 = vld [vmem:[%s159_s24] sm:$0xff]  ;;  %v184_v10 = vld [vmem:[%s159_s24 + $0x8] sm:$0xff]  ;;  %vm196_vm0 = vcmask 261120   ;;  %v185_v13 = vld [vmem:[%s159_s24 + $0x10] sm:$0xff] }
  0x22   : > { %v274_v9 = vld [vmem:[%s159_s24 + $0x20] sm:$0xff]  ;;  %v275_v12 = vld [vmem:[%s159_s24 + $0x28] sm:$0xff]  ;;  %v276_v14 = vld [vmem:[%s159_s24 + $0x30] sm:$0xff]  ;;  %s273_s25 = sshll.u32 %s397_s22, 3 }
  0x23   : > { %v192_v11 = vadd.f32 %v274_v9, %v183_v8  ;;  %v193_v15 = vadd.f32 %v275_v12, %v184_v10  ;;  %v194_v16 = vadd.f32 %v276_v14, %v185_v13  ;;  %v186_v17 = vld [vmem:[%s159_s24 + $0x18] sm:$0xff]  ;;  %s181_s28 = scalar_lea.vmem %s392_s1, %s273_s25 }
  0x24   : > { %v277_v18 = vld [vmem:[%s159_s24 + $0x38] sm:$0xff] }
  0x25   : > { %v195_v19 = vadd.f32 %v277_v18, %v186_v17  ;;  %197 = vst.msk [vmem:[%s181_s28] sm:$0xff] %vm196_vm0, %v192_v11 }
  0x26   : > { %198 = vst.msk [vmem:[%s181_s28 + $0x8] sm:$0xff] %vm196_vm0, %v193_v15 }
  0x27   : > { %199 = vst.msk [vmem:[%s181_s28 + $0x10] sm:$0xff] %vm196_vm0, %v194_v16 }
  0x28   : > { %200 = vst.msk [vmem:[%s181_s28 + $0x18] sm:$0xff] %vm196_vm0, %v195_v19 }
  0x29 PF: > { %p8_p9 = scmp.ge.s32.totalorder %s356_s10, 4   ;;  %s393_s6 = smov %s323_s7 }
  0x2a   : > { %s394_s7 = smov %s365_s13  ;;  %s395_s8 = smov %s356_s10 }
  0x2b   :  { %10 = sbr.rel (!%p8_p9) target bundleno = 2 (0x2), region = 98 }

// kernel: encoder_rnn_forward.2
= control target key start
LH: loop header
LB: loop body
LE: loop exit
PB: predicated region body
PF: predicated region fallthrough
CT: control target
= control target key end

     0   :  { %s1144_s21 = smov 0   ;;  %s1146_s22 = smov 0   ;;  %s1314_s0 = inlined_call_operand.vmem [shape: bf16[64,32], index: 0, kind: input, shape index: {}]   ;;  %s1315_s1 = inlined_call_operand.vmem [shape: bf16[2,32,128], index: 1, kind: input, shape index: {}]   ;;  %s1316_s2 = inlined_call_operand.vmem [shape: bf16[2,32,128], index: 2, kind: input, shape index: {}]   ;;  %s1317_s3 = inlined_call_operand.vmem [shape: f32[2,1,128], index: 3, kind: input, shape index: {}]   ;;  %s1318_s4 = inlined_call_operand.vmem [shape: f32[2,64,32], index: 4, kind: output, shape index: {0}]   ;;  %s1319_s5 = inlined_call_operand.vmem [shape: f32[2,8,32], index: 5, kind: output, shape index: {1}]   ;;  %s1320_s6 = inlined_call_operand.vmem [shape: f32[2,8,32], index: 6, kind: output, shape index: {2}]  }
   0x1   :  { %1321 = sst [smem:[#allocation6_spill]] %s1315_s1  ;;  %s1148_s23 = smov 0  }
   0x2   :  { %1322 = sst [smem:[#allocation7_spill]] %s1316_s2  ;;  %s1150_s24 = smov 0  }
   0x3   :  { %s1152_s25 = smov 0  }
   0x4 LB: > { %s26_s26 = sadd.s32 1, %s1095_s23  ;;  %s29_s27 = sadd.s32 1, %s1099_s24  ;;  %s1103_s25 = sphi %s1152_s25, %s17_s25   ;;  %s1099_s24 = sphi %s1150_s24, %s1331_s24   ;;  %s1095_s23 = sphi %s1148_s23, %s1330_s23   ;;  %s1091_s22 = sphi %s1146_s22, %s1329_s22   ;;  %s1087_s21 = sphi %s1144_s21, %s1328_s21  }
   0x5   : > { %p27_p0 = scmp.ge.s32.totalorder %s26_s26, 2  ;;  %p932_p1 = scmp.ge.s32.totalorder %s1103_s25, 1 }
   0x6   : > { %p284_p2 = scmp.lt.s32.totalorder %s1103_s25, 5 }
   0x7   : > { %s1333_s26 = smov (%p27_p0, %s26_s26), 0  ;;  %s1335_s27 = smov (!%p27_p0, %s29_s27), %s1099_s24 }
   0x8   : > { %p285_p3 = pnand %p932_p1, %p284_p2  ;;  %p31_p4 = scmp.ge.s32.totalorder %s1335_s27, 2 }
   0x9   : > { %s933_s28 = sshll.u32 (!%p285_p3), %s1087_s21, 1  ;;  %p361_p5 = scmp.lt.s32.totalorder (!%p285_p3), %s1091_s22, 1 }
   0xa   : > { %s1337_s27 = smov (%p31_p4, %s1335_s27), 0  ;;  %288 = sbr.rel (%p285_p3) target bundleno = 2406 (0x966), region = 36 }
   0xb   : > { %1323 = sst [smem:[#allocation5_spill]] %s1337_s27  ;;  %s348_s29 = ssub.s32 (!%p285_p3), 1, %s933_s28 }
   0xc   : > { %s349_s30 = smul.u32 (!%p285_p3), %s1091_s22, %s348_s29  ;;  %s1324_s1 = sld [smem:[#allocation6_spill]] (!%p285_p3) }
   0xd   : > { %s1325_s2 = sld [smem:[#allocation7_spill]] (!%p285_p3)  ;;  %p946_p7 = scmp.ne.s32.totalorder (!%p285_p3), %s1087_s21, 0 }
   0xe   : > { %s350_s8 = sadd.s32 (!%p285_p3), %s1087_s21, %s349_s30 }
   0xf   : > { %s1182_s7 = scalar_select %p361_p5, %s1091_s22, 1 }
  0x10   : > { %s934_s9 = sshll.u32 %s350_s8, 2 }
  0x11   : > { %s988_s10 = sshll.u32 %s1182_s7, 4  ;;  %p352_p6 = scmp.lt.s32.totalorder %s934_s9, 7 }
  0x12   : > { %s365_s13 = scalar_lea.vmem %s1324_s1, %s988_s10  ;;  %s1197_s20 = sshll.u32 %s1182_s7, 3 }
  0x13   : > { %s370_s16 = scalar_lea.vmem %s1325_s2, %s988_s10  ;;  %s1339_s9 = smov (!%p352_p6, %s934_s9), 7 }
  0x14   : > { %s935_s28 = sshll.u32 %s1339_s9, 2  ;;  %s384_s29 = sadd.s32 %s1197_s20, %s1339_s9 }
  0x15   : > { %s1203_s11 = scalar_lea.vmem %s1314_s0, %s935_s28  ;;  %s943_s12 = sshll.u32 %s384_s29, 3 }
  0x16   : > { %s1208_s15 = scalar_lea.vmem %s1318_s4, %s943_s12  ;;  %s395_s19 = scalar_lea.vmem %s1319_s5, %s1197_s20 }
  0x17   : > { %s399_s27 = scalar_lea.vmem %s1320_s6, %s1197_s20  ;;  %404 = sbr.rel (%p946_p7) target bundleno = 31 (0x1f), region = 40 }
  0x1c   : > { %vm405_vm0 = vcmask 261120   ;;  %v1105_v0 = vmov 0.0  }
  0x1d   : > { %406 = vst.msk [vmem:[#allocation3] sm:$0xff] %vm405_vm0, %v1105_v0 }
  0x1e   : > { %407 = vst.msk [vmem:[#allocation4] sm:$0xff] %vm405_vm0, %v1105_v0 }
  0x1f PF: > { %v993_v1 = vld [vmem:[%s365_s13 + $0x8] sm:$0xff]  ;;  %v992_v3 = vld [vmem:[%s365_s13] sm:$0xff]  ;;  %vm442_vm1 = vcmask 261120   ;;  %s1326_s21 = scalar_lea.vmem %s1317_s3, %s1182_s7  ;;  %s478_s9 = smul.u32 24, %s1091_s22 }
  0x20   : > { %v995_v2 = vld [vmem:[%s370_s16 + $0x8] sm:$0xff]  ;;  %455 = vmatpush.bf16.msra.mxu0 %v993_v1  ;;  %v994_v4 = vld [vmem:[%s370_s16] sm:$0xff]  ;;  %s1106_s13 = smov 64   ;;  %s1107_s16 = smov 32  }
  0x21   : > { %503 = vmatpush.bf16.msra.mxu1 %v995_v2  ;;  %560 = vmatpush.bf16.msra.mxu2 %v995_v2  ;;  %v990_v6 = vld [vmem:[%s1203_s11] sm:$0xff]  ;;  %v991_v8 = vld [vmem:[%s1203_s11 + $0x8] sm:$0xff]  ;;  %s479_s7 = scalar_lea.vmem [#allocation2], %s478_s9  ;;  %s974_s28 = sshll.u32 %s1091_s22, 3 }
  0x22   : > { %613 = vmatpush.bf16.msra.mxu3 %v995_v2  ;;  %v1040_v9 = vld [vmem:[%s1326_s21] ss:$0 sm:$0xff]  ;;  %s823_s29 = scalar_lea.vmem [#allocation2], %s974_s28  ;;  %s596_s30 = ssub.s32 2, %s1091_s22 }
  0x23   : > { %s1251_s8 = sshll.u32 %s596_s30, 3  ;;  %s981_s12 = smul.u32 4294967272, %s1091_s22 }
  0x24   : > { %v476_v5 = vld [vmem:[#allocation3] sm:$0xff]  ;;  %456 = vmatpush.bf16.msra.mxu0 %v992_v3  ;;  %s598_s11 = scalar_lea.vmem [#allocation2], %s1251_s8  ;;  %s541_s10 = scalar_lea.vmem %s1208_s15, %s478_s9 }
  0x25   : > { %v481_v7 = vpack.c.bf16 %v476_v5, %v476_v5  ;;  %504 = vmatpush.bf16.msra.mxu1 %v994_v4  ;;  %561 = vmatpush.bf16.msra.mxu2 %v994_v4  ;;  %v477_v23 = vld [vmem:[#allocation4] sm:$0xff]  ;;  %s834_s14 = scalar_lea.vmem [#allocation2], %s981_s12  ;;  %s1108_s17 = smov 96  }
  0x26   : > { %614 = vmatpush.bf16.msra.mxu3 %v994_v4  ;;  %s826_s18 = scalar_lea.vmem %s1208_s15, %s974_s28  ;;  %s647_s21 = scalar_lea.vmem %s1208_s15, %s1251_s8 }
  0x27   : > { %963 = vmatmul.msk.bf16.vlgmr.msra.gmra.mxu0 %vm442_vm1, %v990_v6  ;;  %s838_s9 = scalar_lea.vmem %s1208_s15, %s981_s12 }
  0x28   : > { %973 = vmatmul.msk.bf16.vlgmr.msra.gmra.mxu1 %vm442_vm1, %v481_v7 }
  0x29   : > { %667 = vmatpush.bf16.msrb.mxu1 %v995_v2 }
  0x2d   : > { %668 = vmatpush.bf16.msrb.mxu1 %v994_v4 }
  0x37   : > { %964 = vmatmul.msk.bf16.gmra.mxu0 %vm442_vm1, %v991_v8 }
  0xa4   : > { %v458_v10 = vpop.f32.mrf.mxu0 }
  0xa5   : > { %v459_v11 = vadd.f32 %v1040_v9, %v458_v10  ;;  %v506_v12 = vpop.f32.mrf.mxu1 }
  0xa7   : > { %468 = vst [vmem:[#allocation2] sm:$0xff] %v459_v11 }
  0xac   : > { %v460_v13 = vpop.f32.mrf.mxu0 }
  0xad   : > { %v461_v14 = vadd.f32 %v1040_v9, %v460_v13  ;;  %v508_v15 = vpop.f32.mrf.mxu1 }
  0xaf   : > { %469 = vst [vmem:[#allocation2 + $0x8] sm:$0xff] %v461_v14 }
  0xb4   : > { %v463_v16 = vpop.f32.mrf.mxu0 }
  0xb5   : > { %v464_v17 = vadd.f32 %v1040_v9, %v463_v16 }
  0xb7   : > { %470 = vst [vmem:[#allocation2 + $0x10] sm:$0xff] %v464_v17 }
  0xbc   : > { %v465_v18 = vpop.f32.mrf.mxu0 }
  0xbd   : > { %v466_v19 = vadd.f32 %v1040_v9, %v465_v18 }
  0xbf   : > { %471 = vst [vmem:[#allocation2 + $0x18] sm:$0xff] %v466_v19 }
  0xc6   : > { %v480_v20 = vld [vmem:[%s479_s7] sm:$0xff]  ;;  %v975_v39 = vld [vmem:[%s823_s29 + $0x8] sm:$0xff]  ;;  %v982_v13 = vld [vmem:[%s834_s14 + $0x18] sm:$0xff] }
  0xc7   : > { %v510_v21 = vadd.f32 %v506_v12, %v480_v20  ;;  %v599_v58 = vld [vmem:[%s598_s11] sm:$0xff] }
  0xc9   : > { %1041 = vtanh.f32 %v510_v21  ;;  %v511_v24 = vmul.f32 0.5, %v510_v21 }
  0xcb   : > { %1043 = vtanh.f32 %v511_v24 }
  0xcf   : > { %v1042_v22 = vpop.eup %1041 }
  0xd0   : > { %522 = vrot.lane.b32.xlu0 %v1042_v22, %s1106_s13 }
  0xd1   : > { %v1044_v25 = vpop.eup %1043 }
  0xd2   : > { %v513_v26 = vadd.f32 1.0, %v1044_v25 }
  0xd4   : > { %v514_v27 = vmul.f32 0.5, %v513_v26 }
  0xd8   : > { %517 = vrot.lane.b32.xlu0 %v477_v23, %s1107_s16 }
 0x142   : > { %v523_v28 = vpop.permute.xlu0 %522 }
 0x143   : > { %v525_v29 = vmul.f32 %v523_v28, %v514_v27 }
 0x145   : > { %527 = vrot.lane.b32.xlu1 %v525_v29, %s1107_s16 }
 0x14a   : > { %v518_v30 = vpop.permute.xlu0 %517 }
 0x14b   : > { %v520_v31 = vmul.f32 %v518_v30, %v514_v27 }
 0x1b7   : > { %v528_v32 = vpop.permute.xlu1 %527 }
 0x1b8   : > { %v530_v33 = vadd.f32 %v528_v32, %v520_v31 }
 0x1ba   : > { %1045 = vtanh.f32 %v530_v33 }
 0x1c0   : > { %v1046_v34 = vpop.eup %1045 }
 0x1c1   : > { %533 = vrot.lane.b32.xlu1 %v1046_v34, %s1106_s13 }
 0x233   : > { %v534_v35 = vpop.permute.xlu1 %533 }
 0x234   : > { %v1236_v36 = vmul.f32 %v534_v35, %v514_v27 }
 0x236   : > { %v547_v37 = vpack.c.bf16 %v1236_v36, %v1236_v36 }
 0x238   : > { %549 = vrot.lane.b32.xlu2 %v547_v37, %s1107_s16 }
 0x292   : > { %v550_v38 = vpop.permute.xlu2 %549 }
 0x293   : > { %976 = vmatmul.msk.bf16.vlgmr.msra.gmra.mxu2 %vm442_vm1, %v550_v38 }
 0x316   : > { %v563_v40 = vpop.f32.mrf.mxu2 }
 0x317   : > { %v567_v41 = vadd.f32 %v975_v39, %v563_v40 }
 0x319   : > { %1047 = vtanh.f32 %v567_v41  ;;  %v568_v44 = vmul.f32 0.5, %v567_v41 }
 0x31b   : > { %1049 = vtanh.f32 %v568_v44 }
 0x31e   : > { %v565_v42 = vpop.f32.mrf.mxu2 }
 0x31f   : > { %v1048_v43 = vpop.eup %1047 }
 0x320   : > { %575 = vrot.lane.b32.xlu2 %v1048_v43, %s1106_s13 }
 0x321   : > { %v1050_v45 = vpop.eup %1049 }
 0x322   : > { %v570_v46 = vadd.f32 1.0, %v1050_v45 }
 0x324   : > { %v571_v47 = vmul.f32 0.5, %v570_v46 }
 0x326   : > { %v573_v50 = vmul.f32 %v571_v47, %v530_v33 }
 0x37a   : > { %v576_v48 = vpop.permute.xlu2 %575 }
 0x37b   : > { %v578_v49 = vmul.f32 %v576_v48, %v571_v47 }
 0x37d   : > { %580 = vrot.lane.b32.xlu0 %v578_v49, %s1107_s16 }
 0x3ef   : > { %v581_v51 = vpop.permute.xlu0 %580 }
 0x3f0   : > { %v583_v52 = vadd.f32 %v581_v51, %v573_v50 }
 0x3f2   : > { %1051 = vtanh.f32 %v583_v52 }
 0x3f8   : > { %v1052_v53 = vpop.eup %1051 }
 0x3f9   : > { %586 = vrot.lane.b32.xlu1 %v1052_v53, %s1106_s13 }
 0x46b   : > { %v587_v54 = vpop.permute.xlu1 %586 }
 0x46c   : > { %v589_v55 = vmul.f32 %v587_v54, %v571_v47 }
 0x46e   : > { %v600_v56 = vpack.c.bf16 %v589_v55, %v589_v55 }
 0x470   : > { %602 = vrot.lane.b32.xlu2 %v600_v56, %s1107_s16 }
 0x4ca   : > { %v603_v57 = vpop.permute.xlu2 %602 }
 0x4cb   : > { %980 = vmatmul.msk.bf16.vlgmr.msra.gmra.mxu3 %vm442_vm1, %v603_v57 }
 0x54e   : > { %v616_v59 = vpop.f32.mrf.mxu3 }
 0x54f   : > { %v620_v60 = vadd.f32 %v616_v59, %v599_v58 }
 0x551   : > { %1053 = vtanh.f32 %v620_v60  ;;  %v621_v63 = vmul.f32 0.5, %v620_v60 }
 0x553   : > { %1055 = vtanh.f32 %v621_v63 }
 0x556   : > { %v618_v61 = vpop.f32.mrf.mxu3 }
 0x557   : > { %v1054_v62 = vpop.eup %1053 }
 0x558   : > { %628 = vrot.lane.b32.xlu0 %v1054_v62, %s1106_s13 }
 0x559   : > { %v1056_v0 = vpop.eup %1055 }
 0x55a   : > { %v623_v1 = vadd.f32 1.0, %v1056_v0 }
 0x55c   : > { %v624_v2 = vmul.f32 0.5, %v623_v1 }
 0x55e   : > { %v626_v5 = vmul.f32 %v624_v2, %v583_v52 }
 0x5ca   : > { %v629_v3 = vpop.permute.xlu0 %628 }
 0x5cb   : > { %v631_v4 = vmul.f32 %v629_v3, %v624_v2 }
 0x5cd   : > { %633 = vrot.lane.b32.xlu1 %v631_v4, %s1107_s16 }
 0x63f   : > { %v634_v6 = vpop.permute.xlu1 %633 }
 0x640   : > { %v636_v7 = vadd.f32 %v634_v6, %v626_v5 }
 0x642   : > { %1057 = vtanh.f32 %v636_v7 }
 0x648   : > { %v1058_v8 = vpop.eup %1057 }
 0x649   : > { %639 = vrot.lane.b32.xlu2 %v1058_v8, %s1106_s13 }
 0x6a3   : > { %v640_v9 = vpop.permute.xlu2 %639 }
 0x6a4   : > { %v642_v10 = vmul.f32 %v640_v9, %v624_v2 }
 0x6a6   : > { %v654_v11 = vpack.c.bf16 %v642_v10, %v642_v10 }
 0x6a8   : > { %656 = vrot.lane.b32.xlu0 %v654_v11, %s1107_s16 }
 0x71a   : > { %v657_v12 = vpop.permute.xlu0 %656 }
 0x71b   : > { %983 = vmatmul.msk.bf16.vlgmr.msrb.gmra.mxu1 %vm442_vm1, %v657_v12 }
 0x798   : > { %v670_v14 = vpop.f32.mrf.mxu1 }
 0x799   : > { %v674_v15 = vadd.f32 %v982_v13, %v670_v14 }
 0x79b   : > { %1059 = vtanh.f32 %v674_v15  ;;  %v675_v18 = vmul.f32 0.5, %v674_v15 }
 0x79d   : > { %1061 = vtanh.f32 %v675_v18 }
 0x7a0   : > { %v672_v16 = vpop.f32.mrf.mxu1 }
 0x7a1   : > { %v1060_v17 = vpop.eup %1059 }
 0x7a2   : > { %682 = vrot.lane.b32.xlu1 %v1060_v17, %s1106_s13 }
 0x7a3   : > { %v1062_v19 = vpop.eup %1061 }
 0x7a4   : > { %v677_v20 = vadd.f32 1.0, %v1062_v19 }
 0x7a6   : > { %v678_v21 = vmul.f32 0.5, %v677_v20 }
 0x7a8   : > { %v680_v25 = vmul.f32 %v678_v21, %v636_v7 }
 0x7aa   : > { %538 = vrot.lane.b32.xlu1 %v1236_v36, %s1107_s16 }
 0x814   : > { %v683_v22 = vpop.permute.xlu1 %682 }
 0x815   : > { %v685_v23 = vmul.f32 %v683_v22, %v678_v21 }
 0x817   : > { %687 = vrot.lane.b32.xlu2 %v685_v23, %s1107_s16 }
 0x81c   : > { %v539_v24 = vpop.permute.xlu1 %538 }
 0x81d   : > { %542 = vst.msk [vmem:[%s541_s10] sm:$0xff] %vm442_vm1, %v539_v24 }
 0x81f   : > { %591 = vrot.lane.b32.xlu2 %v589_v55, %s1107_s16 }
 0x871   : > { %v688_v26 = vpop.permute.xlu2 %687 }
 0x872   : > { %v690_v27 = vadd.f32 %v688_v26, %v680_v25 }
 0x874   : > { %1063 = vtanh.f32 %v690_v27  ;;  %705 = vrot.lane.b32.xlu2 %v690_v27, %s1108_s17 }
 0x879   : > { %v592_v28 = vpop.permute.xlu2 %591 }
 0x87a   : > { %v1064_v29 = vpop.eup %1063  ;;  %978 = vst.msk [vmem:[%s826_s18 + $0x8] sm:$0xff] %vm442_vm1, %v592_v28 }
 0x87b   : > { %693 = vrot.lane.b32.xlu0 %v1064_v29, %s1106_s13 }
 0x883   : > { %644 = vrot.lane.b32.xlu0 %v642_v10, %s1107_s16 }
 0x8ce   : > { %v706_v30 = vpop.permute.xlu2 %705 }
 0x8cf   : > { %708 = vst.msk [vmem:[#allocation4] sm:$0xff] %vm442_vm1, %v706_v30 }
 0x8d0   : > { %710 = vst.msk [vmem:[%s399_s27] sm:$0xff] %vm442_vm1, %v706_v30 }
 0x8ed   : > { %v694_v31 = vpop.permute.xlu0 %693 }
 0x8ee   : > { %v696_v32 = vmul.f32 %v694_v31, %v678_v21 }
 0x8f0   : > { %698 = vrot.lane.b32.xlu1 %v696_v32, %s1107_s16 }
 0x8f5   : > { %v645_v33 = vpop.permute.xlu0 %644 }
 0x8f6   : > { %648 = vst.msk [vmem:[%s647_s21] sm:$0xff] %vm442_vm1, %v645_v33 }
 0x962   : > { %v699_v34 = vpop.permute.xlu1 %698 }
 0x963   : > { %985 = vst.msk [vmem:[%s838_s9 + $0x18] sm:$0xff] %vm442_vm1, %v699_v34 }
 0x964   : > { %703 = vst.msk [vmem:[#allocation3] sm:$0xff] %vm442_vm1, %v699_v34 }
 0x965   : > { %709 = vst.msk [vmem:[%s395_s19] sm:$0xff] %vm442_vm1, %v699_v34 }
 0x966 PF: > { %s17_s25 = sadd.s32 1, %s1103_s25   ;;  %s1327_s27 = sld [smem:[#allocation5_spill]] }
 0x967   : > { %p14_p8 = scmp.ge.s32.totalorder %s17_s25, 6   ;;  %s1328_s21 = smov %s1095_s23 }
 0x968   : > { %s1329_s22 = smov %s1099_s24  ;;  %s1330_s23 = smov %s1333_s26 }
 0x969   :  { %16 = sbr.rel (!%p14_p8) target bundleno = 4 (0x4), region = 111 }
 0x96c   : > { %s1331_s24 = smov %s1327_s27 }

</bundles_post_ra>
